<compile_context>
chip_gen: v5e
topology: v5e:2x2
jax: 0.10.0
libtpu: 0.0.40
codegen_flags: <defaults>
</compile_context>

<pallas_src>
import functools

import jax
import jax.numpy as jnp
from jax.experimental import pallas as pl
from jax.experimental.pallas import tpu as pltpu

HALO = 16                       # halo rows per row tile; >= max over layers of (Kq - 1)
VMEM_LIMIT = 32 * 1024 * 1024   # comfortably above block working sets on v5e/v6e/v7x


# ----------------------------- small helpers ---------------------------------------- #
def _ceil_div(a, b):
    return -(-a // b)


def _round_up(a, b):
    return _ceil_div(a, b) * b


def _pick_row_tile(l_out, cap):
    tm = min(cap, _round_up(l_out, HALO))
    return max(HALO, (tm // HALO) * HALO)


def _pick_lane_tile(cout, pref):
    if cout % pref == 0:
        return pref
    if cout % 128 == 0:
        return 128
    return cout


def _phase_pack(x, stride, k, l_out):
    """Fold a strided conv into a stride-1 conv over (B, Lq, stride*C):
    packed[b, m, r*C + c] = x[b, m*stride + r, c]; Kq = ceil(K/stride) taps."""
    b, l_in, c = x.shape
    kq = _ceil_div(k, stride)
    lq = l_out - 1 + kq
    need = lq * stride
    if need > l_in:
        x = jnp.pad(x, ((0, 0), (0, need - l_in), (0, 0)))
    elif need < l_in:
        x = x[:, :need, :]
    return x.reshape(b, lq, stride * c), kq


def _apply_act(x, act):
    if act == "leaky_relu":
        return jnp.maximum(x, 0.2 * x)          # single max instead of compare+select
    if act == "relu":
        return jnp.maximum(x, 0.0)
    return x


# ----------------------------- Pallas kernels ---------------------------------------- #
def _matmul_bias_act_kernel(x_ref, w_ref, b_ref, o_ref, *, act):
    """Single lane-dense matmul + bias + activation (used by the phase-packed first layer)."""
    acc = jnp.dot(x_ref[...], w_ref[...], preferred_element_type=jnp.float32)
    o_ref[...] = _apply_act(acc + b_ref[...], act).astype(o_ref.dtype)


def _conv_mxu_kernel(x_ref, xh_ref, w_ref, b_ref, o_ref, strip_ref, *, n_taps, act):
    """Dense conv tile: stitch a (TM+HALO, C) strip once per row tile (output-channel axis
    j is innermost/arbitrary), then accumulate n_taps bf16 MXU matmuls into a register
    f32 accumulator initialized with the bias; activation fused, bf16 store."""
    tm, tn = o_ref.shape

    @pl.when(pl.program_id(1) == 0)             # strip is j-independent; j is innermost
    def _():
        strip_ref[0:tm, :] = x_ref[...]
        strip_ref[tm:tm + HALO, :] = xh_ref[...]

    acc = jnp.broadcast_to(b_ref[...], (tm, tn))
    for q in range(n_taps):
        acc = acc + jnp.dot(strip_ref[q:q + tm, :], w_ref[q],
                            preferred_element_type=jnp.float32)
    o_ref[...] = _apply_act(acc, act).astype(o_ref.dtype)


def _conv_vpu_kernel(x_ref, xh_ref, w_ref, b_ref, o_ref, strip_ref, *, n_taps, n_j, act):
    """Grouped conv tile with exact per-group FLOPs.  The strip is (n_j, rows, lanes) so
    every inner-loop read is a sublane/lane-contiguous (tm, tn) slab; cast to f32 once at
    stitch time, accumulate in registers, fuse the activation."""
    tm, tn = o_ref.shape
    strip_ref[:, 0:tm, :] = x_ref[...].astype(jnp.float32)
    strip_ref[:, tm:tm + HALO, :] = xh_ref[...].astype(jnp.float32)
    acc = jnp.broadcast_to(b_ref[...], (tm, tn))
    for j in range(n_j):
        for q in range(n_taps):
            acc = acc + strip_ref[j, q:q + tm, :] * w_ref[q, j:j + 1, :]
    o_ref[...] = _apply_act(acc, act).astype(o_ref.dtype)


def _conv_cout1_kernel(x_ref, xh_ref, w_ref, b_ref, o_ref, strip_ref, *, n_taps):
    """Single-output-channel conv (output layer): VPU multiply plus cross-lane reduce."""
    tm = o_ref.shape[0]
    strip_ref[0:tm, :] = x_ref[...]
    strip_ref[tm:tm + HALO, :] = xh_ref[...]
    acc = jnp.broadcast_to(b_ref[...], (tm, 1))
    for q in range(n_taps):
        prod = strip_ref[q:q + tm, :].astype(jnp.float32) * w_ref[q:q + 1, :]
        acc = acc + jnp.sum(prod, axis=-1, keepdims=True)
    o_ref[...] = acc.astype(o_ref.dtype)


# ----------------------------- conv wrappers ------------------------------------------ #
def conv1d_cin1_packed(x, w, b, *, act, out_dtype=jnp.bfloat16):
    """First conv layer (Cin == 1, stride 1).  `op` consecutive output positions are
    packed into one 128-lane row (op*Cout == 128) so both the matmul and the stores are
    lane-dense.  x: (B, L_in, 1); w: (Cout, 1, K); b: (Cout,)."""
    bsz, l_in, cin = x.shape
    cout, _, k = w.shape
    assert cin == 1
    l_out = l_in - k + 1
    op = 128 // cout if (cout <= 128 and 128 % cout == 0) else 1
    opc = op * cout
    nb = _ceil_div(l_out, op)
    n_chunk = _ceil_div(k + op - 1, op)
    kcols = n_chunk * op

    tm = 256 if nb >= 256 else _round_up(nb, 8)
    n_rt = _ceil_div(nb, tm)
    nbp = n_rt * tm

    # X[b, m, t] = x[b, op*m + t, 0]  (t < kcols); tiny 1-channel im2col (~n_chunk x).
    need = (nbp + n_chunk - 1) * op
    xf = jnp.pad(x[..., 0].astype(jnp.bfloat16), ((0, 0), (0, need - l_in)))
    xr = xf.reshape(bsz, nbp + n_chunk - 1, op)
    x8 = jnp.concatenate([xr[:, i:i + nbp] for i in range(n_chunk)], axis=2)

    # W[t, p*Cout + c] = w[c, 0, t - p]  (0 <= t - p < K)
    wt = jnp.transpose(w[:, 0, :], (1, 0))                         # (K, Cout)
    w8 = jnp.zeros((kcols, op, cout), jnp.float32)
    for p in range(op):
        w8 = w8.at[p:p + k, p, :].set(wt)
    w8 = w8.reshape(kcols, opc).astype(jnp.bfloat16)
    b8 = jnp.tile(b.astype(jnp.float32), op).reshape(1, opc)

    cost = pl.CostEstimate(flops=2 * bsz * l_out * cout * k, transcendentals=0,
                           bytes_accessed=int(x8.size * 2 + bsz * nbp * opc * 2))

    out = pl.pallas_call(
        functools.partial(_matmul_bias_act_kernel, act=act),
        out_shape=jax.ShapeDtypeStruct((bsz, nbp, opc), out_dtype),
        grid=(bsz, n_rt),
        in_specs=[
            pl.BlockSpec((None, tm, kcols), lambda bb, i: (bb, i, 0)),
            pl.BlockSpec((kcols, opc), lambda bb, i: (0, 0)),
            pl.BlockSpec((1, opc), lambda bb, i: (0, 0)),
        ],
        out_specs=pl.BlockSpec((None, tm, opc), lambda bb, i: (bb, i, 0)),
        compiler_params=pltpu.CompilerParams(
            dimension_semantics=("parallel", "parallel"),
            vmem_limit_bytes=VMEM_LIMIT),
        cost_estimate=cost,
    )(x8, w8, b8)
    # (B, nbp, op*Cout) row-major == (B, nbp*op, Cout): free reshape back to channels-last.
    return out.reshape(bsz, nbp * op, cout)[:, :l_out, :]


def conv1d_mxu(x, w, b, *, stride, act, out_dtype=jnp.bfloat16):
    """Dense Conv1d (groups == 1) on the MXU.  Batch is folded into the row axis so the
    weight matrix streams through VMEM once and MXU M-occupancy is maximized.
    x: (B, L_in, Cin);  w: (Cout, Cin, K) [PyTorch layout];  b: (Cout,)."""
    bsz, l_in, cin = x.shape
    cout, _, k = w.shape
    l_out = (l_in - k) // stride + 1
    xp, kq = _phase_pack(x.astype(jnp.bfloat16), stride, k, l_out)
    c2 = stride * cin
    assert kq - 1 <= HALO

    # fold batch into rows: each batch segment keeps its own zero tail, so sliding taps
    # never mix batches for the rows that are kept.
    lq = xp.shape[1]
    seg = _round_up(lq, 8)
    xp = jnp.pad(xp, ((0, 0), (0, seg - lq), (0, 0)))
    xf = xp.reshape(bsz * seg, c2)
    flat_m = bsz * seg

    tn = 128 if cout % 128 == 0 else cout
    tm = min(128, _round_up(flat_m, HALO))      # register f32 accumulator: tm*tn*4 <= 64 KiB
    n_rt = _ceil_div(flat_m, tm)
    n_nt = cout // tn
    mp = n_rt * tm
    xf = jnp.pad(xf, ((0, mp + HALO - flat_m), (0, 0)))

    wt = jnp.transpose(w, (2, 1, 0))                               # (K, Cin, Cout)
    wt = jnp.pad(wt, ((0, kq * stride - k), (0, 0), (0, 0)))
    wt = wt.reshape(kq, c2, cout).astype(jnp.bfloat16)

    cost = pl.CostEstimate(
        flops=2 * bsz * l_out * cout * cin * k, transcendentals=0,
        bytes_accessed=int(xf.size * 2 + wt.size * 2 * n_rt + mp * cout * 2))

    out = pl.pallas_call(
        functools.partial(_conv_mxu_kernel, n_taps=kq, act=act),
        out_shape=jax.ShapeDtypeStruct((mp, cout), out_dtype),
        grid=(n_rt, n_nt),                                          # j innermost
        in_specs=[
            pl.BlockSpec((tm, c2), lambda i, j: (i, 0)),
            pl.BlockSpec((HALO, c2), lambda i, j: ((i + 1) * (tm // HALO), 0)),
            pl.BlockSpec((kq, c2, tn), lambda i, j: (0, 0, j)),
            pl.BlockSpec((1, tn), lambda i, j: (0, j)),
        ],
        out_specs=pl.BlockSpec((tm, tn), lambda i, j: (i, j)),
        scratch_shapes=[pltpu.VMEM((tm + HALO, c2), jnp.bfloat16)],
        compiler_params=pltpu.CompilerParams(
            dimension_semantics=("parallel", "arbitrary"),
            vmem_limit_bytes=VMEM_LIMIT),
        cost_estimate=cost,
    )(xf, xf, wt, b.reshape(1, cout).astype(jnp.float32))
    return out[:bsz * seg].reshape(bsz, seg, cout)[:, :l_out, :]


def conv1d_grouped_vpu(x, w, b, *, stride, groups, act, out_dtype=jnp.bfloat16):
    """(Grouped) Conv1d on the VPU with exact per-group FLOPs (no block-diagonal
    densification).  x: (B, L_in, Cin);  w: (Cout, Cin//groups, K);  b: (Cout,)."""
    bsz, l_in, cin = x.shape
    cout, in_pg, k = w.shape
    out_pg = cout // groups
    l_out = (l_in - k) // stride + 1
    xp, kq = _phase_pack(x.astype(jnp.bfloat16), stride, k, l_out)
    n_j = stride * in_pg
    assert kq - 1 <= HALO

    # channel expansion so output channels sit on lanes, directly in the
    # (phase/in-channel)-major layout used by the kernel strip:
    #   XE[b, j=r*in_pg+ic, m, co] = xp[b, m, r*Cin + (co // out_pg)*in_pg + ic]
    # TODO(synk): replicate the out_pg-fold lane duplication inside the kernel instead of
    # materializing the out_pg-times-larger xe through HBM.
    r_idx = jnp.arange(stride)[:, None, None]
    ic_idx = jnp.arange(in_pg)[None, :, None]
    co_idx = jnp.arange(cout)[None, None, :]
    chan = (r_idx * cin + (co_idx // out_pg) * in_pg + ic_idx).reshape(-1)
    xe = jnp.take(xp, chan, axis=2).reshape(bsz, xp.shape[1], n_j, cout)
    xe = jnp.transpose(xe, (0, 2, 1, 3))                           # (B, n_j, Lq, Cout)

    # weights in the matching (tap, j=(phase, in-channel), out-channel) layout
    wt = jnp.transpose(w, (2, 1, 0))                               # (K, in_pg, Cout)
    wt = jnp.pad(wt, ((0, kq * stride - k), (0, 0), (0, 0)))
    we = wt.reshape(kq, stride, in_pg, cout).reshape(kq, n_j, cout).astype(jnp.float32)

    tn = _pick_lane_tile(cout, 128)
    # keep the f32 accumulator tile <= 64 KiB (16 vregs) so it stays in registers
    tm = _pick_row_tile(l_out, max(HALO, min(512, 16384 // tn)))
    n_rt = _ceil_div(l_out, tm)
    n_nt = cout // tn
    mp = n_rt * tm
    xe = jnp.pad(xe, ((0, 0), (0, 0), (0, mp + HALO - xe.shape[2]), (0, 0)))

    cost = pl.CostEstimate(
        flops=2 * bsz * l_out * cout * in_pg * k, transcendentals=0,
        bytes_accessed=int(xe.size * 2 + we.size * 4 + bsz * mp * cout * 2))

    out = pl.pallas_call(
        functools.partial(_conv_vpu_kernel, n_taps=kq, n_j=n_j, act=act),
        out_shape=jax.ShapeDtypeStruct((bsz, mp, cout), out_dtype),
        grid=(bsz, n_rt, n_nt),
        in_specs=[
            pl.BlockSpec((None, n_j, tm, tn), lambda bb, i, j: (bb, 0, i, j)),
            pl.BlockSpec((None, n_j, HALO, tn),
                         lambda bb, i, j: (bb, 0, (i + 1) * (tm // HALO), j)),
            pl.BlockSpec((kq, n_j, tn), lambda bb, i, j: (0, 0, j)),
            pl.BlockSpec((1, tn), lambda bb, i, j: (0, j)),
        ],
        out_specs=pl.BlockSpec((None, tm, tn), lambda bb, i, j: (bb, i, j)),
        scratch_shapes=[pltpu.VMEM((n_j, tm + HALO, tn), jnp.float32)],
        compiler_params=pltpu.CompilerParams(
            dimension_semantics=("parallel", "parallel", "parallel"),
            vmem_limit_bytes=VMEM_LIMIT),
        cost_estimate=cost,
    )(xe, xe, we, b.reshape(1, cout).astype(jnp.float32))
    return out[:, :l_out, :]


def conv1d_cout1(x, w, b):
    """Conv1d with a single output channel, stride 1 (output layer).
    x: (B, L_in, Cin);  w: (1, Cin, K);  b: (1,).  Returns f32."""
    bsz, l_in, cin = x.shape
    _, _, k = w.shape
    l_out = l_in - k + 1
    assert k - 1 <= HALO
    xq = x.astype(jnp.bfloat16)
    wt = jnp.transpose(w[0], (1, 0)).astype(jnp.float32)           # (K, Cin)

    tm = _pick_row_tile(l_out, 512 if cin <= 128 else 64)
    n_rt = _ceil_div(l_out, tm)
    mp = n_rt * tm
    xq = jnp.pad(xq, ((0, 0), (0, mp + HALO - l_in), (0, 0)))

    cost = pl.CostEstimate(
        flops=2 * bsz * l_out * cin * k, transcendentals=0,
        bytes_accessed=int(xq.size * 2 + bsz * mp * 4))

    out = pl.pallas_call(
        functools.partial(_conv_cout1_kernel, n_taps=k),
        out_shape=jax.ShapeDtypeStruct((bsz, mp, 1), jnp.float32),
        grid=(bsz, n_rt),
        in_specs=[
            pl.BlockSpec((None, tm, cin), lambda bb, i: (bb, i, 0)),
            pl.BlockSpec((None, HALO, cin),
                         lambda bb, i: (bb, (i + 1) * (tm // HALO), 0)),
            pl.BlockSpec((k, cin), lambda bb, i: (0, 0)),
            pl.BlockSpec((1, 1), lambda bb, i: (0, 0)),
        ],
        out_specs=pl.BlockSpec((None, tm, 1), lambda bb, i: (bb, i, 0)),
        scratch_shapes=[pltpu.VMEM((tm + HALO, cin), jnp.bfloat16)],
        compiler_params=pltpu.CompilerParams(
            dimension_semantics=("parallel", "parallel"),
            vmem_limit_bytes=VMEM_LIMIT),
        cost_estimate=cost,
    )(xq, xq, wt, b.reshape(1, 1).astype(jnp.float32))
    return out[:, :l_out, :]


def avg_pool1d(x):
    """nn.AvgPool1d(4, stride=2, padding=1, count_include_pad=False) on (B, L, 1).
    Done with a few tiny XLA ops (per review: a Pallas call here was pure launch overhead)."""
    bsz, l, c = x.shape
    l_out = (l + 2 - 4) // 2 + 1
    extra = max(0, 2 * l_out + 2 - (l + 2))
    xp = jnp.pad(x, ((0, 0), (1, 1 + extra), (0, 0)))
    s = (xp[:, 0:2 * l_out:2] + xp[:, 1:1 + 2 * l_out:2]
         + xp[:, 2:2 + 2 * l_out:2] + xp[:, 3:3 + 2 * l_out:2])
    starts = jnp.arange(l_out) * 2 - 1
    counts = (jnp.minimum(starts + 4, l) - jnp.maximum(starts, 0)).astype(x.dtype)
    return s / counts[None, :, None]


# ----------------------------- parameter construction --------------------------------- #
def _weight_norm_conv_init(key, out_ch, in_per_group, ksize):
    """PyTorch Conv1d default init + weight_norm fold (at init g = ||v||, so w == v)."""
    kv, kb = jax.random.split(key)
    bound = 1.0 / (in_per_group * ksize) ** 0.5
    v = jax.random.uniform(kv, (out_ch, in_per_group, ksize), jnp.float32, -bound, bound)
    norm = jnp.sqrt(jnp.sum(v * v, axis=(1, 2), keepdims=True))
    w = norm * v / norm                                            # == v; kept explicit
    bias = jax.random.uniform(kb, (out_ch,), jnp.float32, -bound, bound)
    return w, bias


def _layer_kind(cfg):
    if cfg["out_ch"] == 1:
        return "cout1"
    if cfg["in_ch"] == 1 and cfg["stride"] == 1:
        return "packed"                     # lane-dense output-packed first layer
    if cfg["groups"] > 1:
        return "vpu"                        # exact-FLOP grouped conv
    return "mxu"                            # wide dense layers -> MXU kernel


def init_discriminator_block(key, downsampling_layers_num=4, features=16,
                             downsampling_factor=1):
    """Mirrors DiscriminatorBlock.__init__ layer construction exactly."""
    cfgs = [dict(in_ch=1, out_ch=features, k=15, stride=1, groups=1, pad=0,
                 act="leaky_relu")]
    ksize = downsampling_factor * 10 + 1
    cur = features
    for _ in range(1, downsampling_layers_num + 1):
        cfgs.append(dict(in_ch=min(cur, 1024),
                         out_ch=min(cur * downsampling_factor, 1024),
                         k=ksize, stride=downsampling_factor,
                         groups=min(cur * downsampling_factor // 4, 256),
                         pad=0, act="leaky_relu"))
        cur *= downsampling_factor
    cfgs.append(dict(in_ch=min(cur, 1024), out_ch=min(cur * 2, 1024), k=5,
                     stride=1, groups=1, pad=2, act="relu"))
    cfgs.append(dict(in_ch=min(cur * 2, 1024), out_ch=1, k=3, stride=1, groups=1,
                     pad=1, act="none"))

    params = []
    for cfg, k in zip(cfgs, jax.random.split(key, len(cfgs))):
        w, bias = _weight_norm_conv_init(k, cfg["out_ch"],
                                         cfg["in_ch"] // cfg["groups"], cfg["k"])
        params.append(dict(kind=_layer_kind(cfg), w=w, b=bias, stride=cfg["stride"],
                           groups=cfg["groups"], pad=cfg["pad"], act=cfg["act"]))
    return params


def init_discriminator(key, discriminator_number=3, downsampling_factor=4):
    keys = jax.random.split(key, discriminator_number)
    return [init_discriminator_block(k, downsampling_factor=downsampling_factor)
            for k in keys]


# ----------------------------- forward passes ----------------------------------------- #
def _apply_conv_layer(p, x):
    if p["pad"]:
        x = jnp.pad(x, ((0, 0), (p["pad"], p["pad"]), (0, 0)))
    if p["kind"] == "packed":
        return conv1d_cin1_packed(x, p["w"], p["b"], act=p["act"])
    if p["kind"] == "mxu":
        return conv1d_mxu(x, p["w"], p["b"], stride=p["stride"], act=p["act"])
    if p["kind"] == "cout1":
        return conv1d_cout1(x, p["w"], p["b"])
    return conv1d_grouped_vpu(x, p["w"], p["b"], stride=p["stride"],
                              groups=p["groups"], act=p["act"])


def discriminator_block_forward(block_params, x):
    """Faithful to the PyTorch forward: ReflectionPad1d(7) is applied twice (once as
    `padded = input_padding(inp)` and again when the layer loop revisits it)."""
    feats = []
    f = jnp.pad(x, ((0, 0), (7, 7), (0, 0)), mode="reflect")
    f = jnp.pad(f, ((0, 0), (7, 7), (0, 0)), mode="reflect")
    feats.append(f)
    for p in block_params:
        f = _apply_conv_layer(p, f)
        feats.append(f)
    return feats


def discriminator_forward(params, x):
    outputs = []
    for block_params in params:
        outputs.append(discriminator_block_forward(block_params, x))
        x = avg_pool1d(x)                                          # input for next block
    return outputs


# ----------------------------- reference conv for self-check -------------------------- #
def _conv1d_reference(x, w, b, stride, groups):
    bsz, l_in, cin = x.shape
    cout, in_pg, k = w.shape
    out_pg = cout // groups
    l_out = (l_in - k) // stride + 1
    idx = jnp.arange(l_out)[:, None] * stride + jnp.arange(k)[None, :]
    patches = x[:, idx, :].reshape(bsz, l_out, k, groups, in_pg)
    wg = w.reshape(groups, out_pg, in_pg, k)
    out = jnp.einsum("blkgi,goik->blgo", patches, wg)
    return out.reshape(bsz, l_out, cout) + b[None, None, :]


# ----------------------------- demo ---------------------------------------------------- #
if __name__ == "__main__":
    key = jax.random.PRNGKey(0)
    k_param, k_data = jax.random.split(key)

    # Quick numerical self-checks of the three conv kernels against a direct jnp
    # convolution (bf16 inputs/outputs -> loose tolerance).
    xs = jax.random.normal(jax.random.PRNGKey(1), (2, 64, 8), jnp.float32)
    wg, bg = _weight_norm_conv_init(jax.random.PRNGKey(2), 8, 2, 5)    # groups=4 conv
    assert jnp.allclose(
        conv1d_grouped_vpu(xs, wg, bg, stride=2, groups=4, act="none").astype(jnp.float32),
        _conv1d_reference(xs, wg, bg, 2, 4), atol=3e-2, rtol=3e-2)
    wd, bd = _weight_norm_conv_init(jax.random.PRNGKey(3), 256, 8, 5)  # dense conv
    assert jnp.allclose(
        conv1d_mxu(xs, wd, bd, stride=1, act="none").astype(jnp.float32),
        _conv1d_reference(xs, wd, bd, 1, 1), atol=3e-2, rtol=3e-2)
    x0 = jax.random.normal(jax.random.PRNGKey(4), (2, 80, 1), jnp.float32)
    w0, b0 = _weight_norm_conv_init(jax.random.PRNGKey(5), 16, 1, 15)  # packed first layer
    assert jnp.allclose(
        conv1d_cin1_packed(x0, w0, b0, act="none").astype(jnp.float32),
        _conv1d_reference(x0, w0, b0, 1, 1), atol=3e-2, rtol=3e-2)

    # Real default config: 3 discriminator blocks, downsampling_factor=4.  The most
    # downsampled block sees L/4 samples and needs ~3.4k of them to survive four
    # stride-4 convs, so L=16384 is about the smallest round working length.
    batch, length = 2, 16384
    params = init_discriminator(k_param, discriminator_number=3, downsampling_factor=4)

    # PyTorch input would be (B, 1, L); this implementation is channels-last (B, L, 1).
    x = jax.random.normal(k_data, (batch, length, 1), dtype=jnp.float32)

    fwd = jax.jit(lambda inp: discriminator_forward(params, inp))
    outputs = fwd(x)
    jax.block_until_ready(outputs)

    # 3 discriminators, 8 feature maps each, final map has 1 channel, finite values.
    assert len(outputs) == 3
    assert all(len(feats) == 8 for feats in outputs)
    assert all(feats[-1].shape[-1] == 1 for feats in outputs)
    assert all(bool(jnp.isfinite(feats[-1]).all()) for feats in outputs)

    print("KERNEL_OK")
</pallas_src>

<mosaic_0001>
module attributes {stable_mosaic.version = 11 : i64} {
  func.func @_conv_vpu_kernel(%arg0: i32, %arg1: i32, %arg2: i32, %arg3: memref<1x4x32x8xbf16, #tpu.memory_space<vmem>>, %arg4: memref<1x4x16x8xbf16, #tpu.memory_space<vmem>>, %arg5: memref<3x4x8xf32, #tpu.memory_space<vmem>>, %arg6: memref<1x8xf32, #tpu.memory_space<vmem>>, %arg7: memref<1x32x8xbf16, #tpu.memory_space<vmem>>, %arg8: memref<4x48x8xf32, #tpu.memory_space<vmem>>) attributes {dimension_semantics = [#tpu.dimension_semantics<parallel>, #tpu.dimension_semantics<parallel>, #tpu.dimension_semantics<parallel>], iteration_bounds = array<i64: 2, 1, 1>, scalar_prefetch = 0 : i64, scratch_operands = 1 : i64, tpu.core_type = #tpu.core_type<tc>, window_params = [{transform_indices = @transform_0, window_bounds = array<i64: 1, 4, 32, 8>}, {transform_indices = @transform_1, window_bounds = array<i64: 1, 4, 16, 8>}, {transform_indices = @transform_2, window_bounds = array<i64: 3, 4, 8>}, {transform_indices = @transform_3, window_bounds = array<i64: 1, 8>}, {transform_indices = @transform_4, window_bounds = array<i64: 1, 32, 8>}]} {
    %c0 = arith.constant 0 : index
    %c0_0 = arith.constant 0 : index
    %c0_1 = arith.constant 0 : index
    %c0_2 = arith.constant 0 : index
    %0 = vector.load %arg3[%c0, %c0_0, %c0_1, %c0_2] : memref<1x4x32x8xbf16, #tpu.memory_space<vmem>>, vector<1x4x32x8xbf16>
    %1 = vector.shape_cast %0 : vector<1x4x32x8xbf16> to vector<4x32x8xbf16>
    %2 = arith.extf %1 : vector<4x32x8xbf16> to vector<4x32x8xf32>
    %c0_3 = arith.constant 0 : index
    %c0_4 = arith.constant 0 : index
    %c0_5 = arith.constant 0 : index
    %3 = vector.load %arg8[%c0_3, %c0_4, %c0_5] : memref<4x48x8xf32, #tpu.memory_space<vmem>>, vector<4x32x8xf32>
    tpu.vector_store %arg8[%c0_3, %c0_4, %c0_5], %2 {strides = array<i32>} : memref<4x48x8xf32, #tpu.memory_space<vmem>>, vector<4x32x8xf32>,
    %c0_6 = arith.constant 0 : index
    %c0_7 = arith.constant 0 : index
    %c0_8 = arith.constant 0 : index
    %c0_9 = arith.constant 0 : index
    %4 = vector.load %arg4[%c0_6, %c0_7, %c0_8, %c0_9] : memref<1x4x16x8xbf16, #tpu.memory_space<vmem>>, vector<1x4x16x8xbf16>
    %5 = vector.shape_cast %4 : vector<1x4x16x8xbf16> to vector<4x16x8xbf16>
    %6 = arith.extf %5 : vector<4x16x8xbf16> to vector<4x16x8xf32>
    %c0_10 = arith.constant 0 : index
    %c32 = arith.constant 32 : index
    %c0_11 = arith.constant 0 : index
    %7 = vector.load %arg8[%c0_10, %c32, %c0_11] : memref<4x48x8xf32, #tpu.memory_space<vmem>>, vector<4x16x8xf32>
    tpu.vector_store %arg8[%c0_10, %c32, %c0_11], %6 {strides = array<i32>} : memref<4x48x8xf32, #tpu.memory_space<vmem>>, vector<4x16x8xf32>,
    %c0_12 = arith.constant 0 : index
    %c0_13 = arith.constant 0 : index
    %8 = vector.load %arg6[%c0_12, %c0_13] : memref<1x8xf32, #tpu.memory_space<vmem>>, vector<1x8xf32>
    %9 = vector.shape_cast %8 : vector<1x8xf32> to vector<1x8xf32>
    %10 = vector.broadcast %9 : vector<1x8xf32> to vector<32x8xf32>
    %c0_14 = arith.constant 0 : index
    %c0_15 = arith.constant 0 : index
    %c0_16 = arith.constant 0 : index
    %11 = vector.load %arg8[%c0_14, %c0_15, %c0_16] : memref<4x48x8xf32, #tpu.memory_space<vmem>>, vector<1x32x8xf32>
    %12 = vector.shape_cast %11 : vector<1x32x8xf32> to vector<32x8xf32>
    %c0_17 = arith.constant 0 : index
    %c0_18 = arith.constant 0 : index
    %c0_19 = arith.constant 0 : index
    %13 = vector.load %arg5[%c0_17, %c0_18, %c0_19] : memref<3x4x8xf32, #tpu.memory_space<vmem>>, vector<1x1x8xf32>
    %14 = vector.shape_cast %13 : vector<1x1x8xf32> to vector<1x8xf32>
    %15 = vector.broadcast %14 : vector<1x8xf32> to vector<32x8xf32>
    %16 = arith.mulf %12, %15 : vector<32x8xf32>
    %17 = arith.addf %10, %16 : vector<32x8xf32>
    %c0_20 = arith.constant 0 : index
    %c1 = arith.constant 1 : index
    %c0_21 = arith.constant 0 : index
    %18 = vector.load %arg8[%c0_20, %c1, %c0_21] : memref<4x48x8xf32, #tpu.memory_space<vmem>>, vector<1x32x8xf32>
    %19 = vector.shape_cast %18 : vector<1x32x8xf32> to vector<32x8xf32>
    %c1_22 = arith.constant 1 : index
    %c0_23 = arith.constant 0 : index
    %c0_24 = arith.constant 0 : index
    %20 = vector.load %arg5[%c1_22, %c0_23, %c0_24] : memref<3x4x8xf32, #tpu.memory_space<vmem>>, vector<1x1x8xf32>
    %21 = vector.shape_cast %20 : vector<1x1x8xf32> to vector<1x8xf32>
    %22 = vector.broadcast %21 : vector<1x8xf32> to vector<32x8xf32>
    %23 = arith.mulf %19, %22 : vector<32x8xf32>
    %24 = arith.addf %17, %23 : vector<32x8xf32>
    %c0_25 = arith.constant 0 : index
    %c2 = arith.constant 2 : index
    %c0_26 = arith.constant 0 : index
    %25 = vector.load %arg8[%c0_25, %c2, %c0_26] : memref<4x48x8xf32, #tpu.memory_space<vmem>>, vector<1x32x8xf32>
    %26 = vector.shape_cast %25 : vector<1x32x8xf32> to vector<32x8xf32>
    %c2_27 = arith.constant 2 : index
    %c0_28 = arith.constant 0 : index
    %c0_29 = arith.constant 0 : index
    %27 = vector.load %arg5[%c2_27, %c0_28, %c0_29] : memref<3x4x8xf32, #tpu.memory_space<vmem>>, vector<1x1x8xf32>
    %28 = vector.shape_cast %27 : vector<1x1x8xf32> to vector<1x8xf32>
    %29 = vector.broadcast %28 : vector<1x8xf32> to vector<32x8xf32>
    %30 = arith.mulf %26, %29 : vector<32x8xf32>
    %31 = arith.addf %24, %30 : vector<32x8xf32>
    %c1_30 = arith.constant 1 : index
    %c0_31 = arith.constant 0 : index
    %c0_32 = arith.constant 0 : index
    %32 = vector.load %arg8[%c1_30, %c0_31, %c0_32] : memref<4x48x8xf32, #tpu.memory_space<vmem>>, vector<1x32x8xf32>
    %33 = vector.shape_cast %32 : vector<1x32x8xf32> to vector<32x8xf32>
    %c0_33 = arith.constant 0 : index
    %c1_34 = arith.constant 1 : index
    %c0_35 = arith.constant 0 : index
    %34 = vector.load %arg5[%c0_33, %c1_34, %c0_35] : memref<3x4x8xf32, #tpu.memory_space<vmem>>, vector<1x1x8xf32>
    %35 = vector.shape_cast %34 : vector<1x1x8xf32> to vector<1x8xf32>
    %36 = vector.broadcast %35 : vector<1x8xf32> to vector<32x8xf32>
    %37 = arith.mulf %33, %36 : vector<32x8xf32>
    %38 = arith.addf %31, %37 : vector<32x8xf32>
    %c1_36 = arith.constant 1 : index
    %c1_37 = arith.constant 1 : index
    %c0_38 = arith.constant 0 : index
    %39 = vector.load %arg8[%c1_36, %c1_37, %c0_38] : memref<4x48x8xf32, #tpu.memory_space<vmem>>, vector<1x32x8xf32>
    %40 = vector.shape_cast %39 : vector<1x32x8xf32> to vector<32x8xf32>
    %c1_39 = arith.constant 1 : index
    %c1_40 = arith.constant 1 : index
    %c0_41 = arith.constant 0 : index
    %41 = vector.load %arg5[%c1_39, %c1_40, %c0_41] : memref<3x4x8xf32, #tpu.memory_space<vmem>>, vector<1x1x8xf32>
    %42 = vector.shape_cast %41 : vector<1x1x8xf32> to vector<1x8xf32>
    %43 = vector.broadcast %42 : vector<1x8xf32> to vector<32x8xf32>
    %44 = arith.mulf %40, %43 : vector<32x8xf32>
    %45 = arith.addf %38, %44 : vector<32x8xf32>
    %c1_42 = arith.constant 1 : index
    %c2_43 = arith.constant 2 : index
    %c0_44 = arith.constant 0 : index
    %46 = vector.load %arg8[%c1_42, %c2_43, %c0_44] : memref<4x48x8xf32, #tpu.memory_space<vmem>>, vector<1x32x8xf32>
    %47 = vector.shape_cast %46 : vector<1x32x8xf32> to vector<32x8xf32>
    %c2_45 = arith.constant 2 : index
    %c1_46 = arith.constant 1 : index
    %c0_47 = arith.constant 0 : index
    %48 = vector.load %arg5[%c2_45, %c1_46, %c0_47] : memref<3x4x8xf32, #tpu.memory_space<vmem>>, vector<1x1x8xf32>
    %49 = vector.shape_cast %48 : vector<1x1x8xf32> to vector<1x8xf32>
    %50 = vector.broadcast %49 : vector<1x8xf32> to vector<32x8xf32>
    %51 = arith.mulf %47, %50 : vector<32x8xf32>
    %52 = arith.addf %45, %51 : vector<32x8xf32>
    %c2_48 = arith.constant 2 : index
    %c0_49 = arith.constant 0 : index
    %c0_50 = arith.constant 0 : index
    %53 = vector.load %arg8[%c2_48, %c0_49, %c0_50] : memref<4x48x8xf32, #tpu.memory_space<vmem>>, vector<1x32x8xf32>
    %54 = vector.shape_cast %53 : vector<1x32x8xf32> to vector<32x8xf32>
    %c0_51 = arith.constant 0 : index
    %c2_52 = arith.constant 2 : index
    %c0_53 = arith.constant 0 : index
    %55 = vector.load %arg5[%c0_51, %c2_52, %c0_53] : memref<3x4x8xf32, #tpu.memory_space<vmem>>, vector<1x1x8xf32>
    %56 = vector.shape_cast %55 : vector<1x1x8xf32> to vector<1x8xf32>
    %57 = vector.broadcast %56 : vector<1x8xf32> to vector<32x8xf32>
    %58 = arith.mulf %54, %57 : vector<32x8xf32>
    %59 = arith.addf %52, %58 : vector<32x8xf32>
    %c2_54 = arith.constant 2 : index
    %c1_55 = arith.constant 1 : index
    %c0_56 = arith.constant 0 : index
    %60 = vector.load %arg8[%c2_54, %c1_55, %c0_56] : memref<4x48x8xf32, #tpu.memory_space<vmem>>, vector<1x32x8xf32>
    %61 = vector.shape_cast %60 : vector<1x32x8xf32> to vector<32x8xf32>
    %c1_57 = arith.constant 1 : index
    %c2_58 = arith.constant 2 : index
    %c0_59 = arith.constant 0 : index
    %62 = vector.load %arg5[%c1_57, %c2_58, %c0_59] : memref<3x4x8xf32, #tpu.memory_space<vmem>>, vector<1x1x8xf32>
    %63 = vector.shape_cast %62 : vector<1x1x8xf32> to vector<1x8xf32>
    %64 = vector.broadcast %63 : vector<1x8xf32> to vector<32x8xf32>
    %65 = arith.mulf %61, %64 : vector<32x8xf32>
    %66 = arith.addf %59, %65 : vector<32x8xf32>
    %c2_60 = arith.constant 2 : index
    %c2_61 = arith.constant 2 : index
    %c0_62 = arith.constant 0 : index
    %67 = vector.load %arg8[%c2_60, %c2_61, %c0_62] : memref<4x48x8xf32, #tpu.memory_space<vmem>>, vector<1x32x8xf32>
    %68 = vector.shape_cast %67 : vector<1x32x8xf32> to vector<32x8xf32>
    %c2_63 = arith.constant 2 : index
    %c2_64 = arith.constant 2 : index
    %c0_65 = arith.constant 0 : index
    %69 = vector.load %arg5[%c2_63, %c2_64, %c0_65] : memref<3x4x8xf32, #tpu.memory_space<vmem>>, vector<1x1x8xf32>
    %70 = vector.shape_cast %69 : vector<1x1x8xf32> to vector<1x8xf32>
    %71 = vector.broadcast %70 : vector<1x8xf32> to vector<32x8xf32>
    %72 = arith.mulf %68, %71 : vector<32x8xf32>
    %73 = arith.addf %66, %72 : vector<32x8xf32>
    %c3 = arith.constant 3 : index
    %c0_66 = arith.constant 0 : index
    %c0_67 = arith.constant 0 : index
    %74 = vector.load %arg8[%c3, %c0_66, %c0_67] : memref<4x48x8xf32, #tpu.memory_space<vmem>>, vector<1x32x8xf32>
    %75 = vector.shape_cast %74 : vector<1x32x8xf32> to vector<32x8xf32>
    %c0_68 = arith.constant 0 : index
    %c3_69 = arith.constant 3 : index
    %c0_70 = arith.constant 0 : index
    %76 = vector.load %arg5[%c0_68, %c3_69, %c0_70] : memref<3x4x8xf32, #tpu.memory_space<vmem>>, vector<1x1x8xf32>
    %77 = vector.shape_cast %76 : vector<1x1x8xf32> to vector<1x8xf32>
    %78 = vector.broadcast %77 : vector<1x8xf32> to vector<32x8xf32>
    %79 = arith.mulf %75, %78 : vector<32x8xf32>
    %80 = arith.addf %73, %79 : vector<32x8xf32>
    %c3_71 = arith.constant 3 : index
    %c1_72 = arith.constant 1 : index
    %c0_73 = arith.constant 0 : index
    %81 = vector.load %arg8[%c3_71, %c1_72, %c0_73] : memref<4x48x8xf32, #tpu.memory_space<vmem>>, vector<1x32x8xf32>
    %82 = vector.shape_cast %81 : vector<1x32x8xf32> to vector<32x8xf32>
    %c1_74 = arith.constant 1 : index
    %c3_75 = arith.constant 3 : index
    %c0_76 = arith.constant 0 : index
    %83 = vector.load %arg5[%c1_74, %c3_75, %c0_76] : memref<3x4x8xf32, #tpu.memory_space<vmem>>, vector<1x1x8xf32>
    %84 = vector.shape_cast %83 : vector<1x1x8xf32> to vector<1x8xf32>
    %85 = vector.broadcast %84 : vector<1x8xf32> to vector<32x8xf32>
    %86 = arith.mulf %82, %85 : vector<32x8xf32>
    %87 = arith.addf %80, %86 : vector<32x8xf32>
    %c3_77 = arith.constant 3 : index
    %c2_78 = arith.constant 2 : index
    %c0_79 = arith.constant 0 : index
    %88 = vector.load %arg8[%c3_77, %c2_78, %c0_79] : memref<4x48x8xf32, #tpu.memory_space<vmem>>, vector<1x32x8xf32>
    %89 = vector.shape_cast %88 : vector<1x32x8xf32> to vector<32x8xf32>
    %c2_80 = arith.constant 2 : index
    %c3_81 = arith.constant 3 : index
    %c0_82 = arith.constant 0 : index
    %90 = vector.load %arg5[%c2_80, %c3_81, %c0_82] : memref<3x4x8xf32, #tpu.memory_space<vmem>>, vector<1x1x8xf32>
    %91 = vector.shape_cast %90 : vector<1x1x8xf32> to vector<1x8xf32>
    %92 = vector.broadcast %91 : vector<1x8xf32> to vector<32x8xf32>
    %93 = arith.mulf %89, %92 : vector<32x8xf32>
    %94 = arith.addf %87, %93 : vector<32x8xf32>
    %95 = arith.truncf %94 : vector<32x8xf32> to vector<32x8xbf16>
    %c0_83 = arith.constant 0 : index
    %c0_84 = arith.constant 0 : index
    %c0_85 = arith.constant 0 : index
    %96 = vector.load %arg7[%c0_83, %c0_84, %c0_85] : memref<1x32x8xbf16, #tpu.memory_space<vmem>>, vector<1x32x8xbf16>
    %97 = vector.shape_cast %96 : vector<1x32x8xbf16> to vector<32x8xbf16>
    %98 = vector.shape_cast %95 : vector<32x8xbf16> to vector<1x32x8xbf16>
    tpu.vector_store %arg7[%c0_83, %c0_84, %c0_85], %98 {strides = array<i32>} : memref<1x32x8xbf16, #tpu.memory_space<vmem>>, vector<1x32x8xbf16>,
    return
  }
  func.func @transform_0(%arg0: i32, %arg1: i32, %arg2: i32) -> (i32, i32, i32, i32) {
    %c0_i32 = arith.constant 0 : i32
    %c0_i32_0 = arith.constant 0 : i32
    return %arg0, %c0_i32, %arg1, %arg2 : i32, i32, i32, i32
  }
  func.func @transform_1(%arg0: i32, %arg1: i32, %arg2: i32) -> (i32, i32, i32, i32) {
    %c1_i32 = arith.constant 1 : i32
    %0 = arith.addi %arg1, %c1_i32 : i32
    %c2_i32 = arith.constant 2 : i32
    %1 = arith.muli %0, %c2_i32 : i32
    %c0_i32 = arith.constant 0 : i32
    %c0_i32_0 = arith.constant 0 : i32
    return %arg0, %c0_i32, %1, %arg2 : i32, i32, i32, i32
  }
  func.func @transform_2(%arg0: i32, %arg1: i32, %arg2: i32) -> (i32, i32, i32) {
    %c0_i32 = arith.constant 0 : i32
    %c0_i32_0 = arith.constant 0 : i32
    %c0_i32_1 = arith.constant 0 : i32
    return %c0_i32, %c0_i32_0, %arg2 : i32, i32, i32
  }
  func.func @transform_3(%arg0: i32, %arg1: i32, %arg2: i32) -> (i32, i32) {
    %c0_i32 = arith.constant 0 : i32
    %c0_i32_0 = arith.constant 0 : i32
    return %c0_i32, %arg2 : i32, i32
  }
  func.func @transform_4(%arg0: i32, %arg1: i32, %arg2: i32) -> (i32, i32, i32) {
    %c0_i32 = arith.constant 0 : i32
    return %arg0, %arg1, %arg2 : i32, i32, i32
  }
}

</mosaic_0001>

<bundles_post_ra>
// kernel: tpu_custom_call.1
= control target key start
LH: loop header
LB: loop body
LE: loop exit
PB: predicated region body
PF: predicated region fallthrough
CT: control target
= control target key end

     0   :  { %s1353_s15 = smov 0   ;;  %s1355_s16 = smov 0   ;;  %s1648_s0 = inlined_call_operand.vmem [shape: bf16[2,4,48,8], index: 0, kind: input, shape index: {}]   ;;  %s1649_s1 = inlined_call_operand.vmem [shape: bf16[2,4,48,8], index: 1, kind: input, shape index: {}]   ;;  %s1650_s2 = inlined_call_operand.vmem [shape: f32[3,4,8], index: 2, kind: input, shape index: {}]   ;;  %s1651_s3 = inlined_call_operand.vmem [shape: f32[1,8], index: 3, kind: input, shape index: {}]   ;;  %s1652_s4 = inlined_call_operand.vmem [shape: bf16[2,32,8], index: 4, kind: output, shape index: {}]  }
   0x1   :  { %s1357_s17 = smov 0   ;;  %s1359_s18 = smov 0  }
   0x2   :  { %s1361_s19 = smov 0  }
   0x3 LB: > { %s33_s20 = sadd.s32 1, %s1318_s18  ;;  %p51_p1 = scmp.ne.s32.totalorder %s1310_s16, %s1306_s15  ;;  %s1322_s19 = sphi %s1361_s19, %s14_s19   ;;  %s1318_s18 = sphi %s1359_s18, %s1657_s18   ;;  %s1314_s17 = sphi %s1357_s17, %s1656_s17   ;;  %s1310_s16 = sphi %s1355_s16, %s1655_s16   ;;  %s1306_s15 = sphi %s1353_s15, %s1654_s15  }
   0x4   : > { %p35_p0 = scmp.ge.s32.totalorder %s33_s20, 2  ;;  %p52_p2 = scmp.eq.s32.totalorder %s1322_s19, 0 }
   0x5   : > { %s44_s23 = sadd.s32 1, %s1310_s16  ;;  %p1087_p5 = scmp.ge.s32.totalorder %s1322_s19, 2 }
   0x6   : > { %s1659_s20 = smov (%p35_p0, %s33_s20), 0  ;;  %p1384_p3 = por %p52_p2, %p51_p1 }
   0x7   : > { %s37_s22 = ssub.s32 %s1318_s18, %s1659_s20  ;;  %206 = sbr.rel (%p1087_p5) target bundleno = 43 (0x2b), region = 24 }
   0x8   : > { %p42_p4 = scmp.eq.s32.totalorder %s37_s22, 0 }
   0xa   : > { %s1392_s24 = scalar_select %p42_p4, %s1310_s16, %s44_s23  }
   0xc   : > { %209 = sbr.rel (!%p1384_p3) target bundleno = 34 (0x22), region = 28  ;;  %s211_s25 = sand.u32 (%p1384_p3), 1, %s1310_s16  }
   0xd   : > { %s1182_s26 = smul.u32 (%p1384_p3), 96, %s1318_s18  ;;  %s1088_s27 = sshll.u32 (%p1384_p3), %s211_s25, 6 }
   0xe   : > { %s1404_s5 = scalar_lea.vmem (%p1384_p3), [#allocation3], %s1088_s27   ;;  %s1406_s6 = smov (%p1384_p3), 0  }
   0xf   : > { %s1402_s30 = scalar_lea.vmem (%p1384_p3), %s1648_s0, %s1182_s26  }
  0x11 LB: >> { %v244_v0 = vld [vmem:[%s1402_s30] sm:$0xf]  ;;  %v246_v1 = vld [vmem:[%s1402_s30 + $0x4] sm:$0xf]  ;;  %v248_v2 = vld [vmem:[%s1402_s30 + $0x8] sm:$0xf]  ;;  %s1326_s6 = sphi %s1406_s6, %s238_s6  }
  0x12   : >> { %245 = vst [vmem:[%s1404_s5] sm:$0xf] %v244_v0  ;;  %v250_v3 = vld [vmem:[%s1402_s30 + $0xc] sm:$0xf]  ;;  %v252_v4 = vld [vmem:[%s1402_s30 + $0x18] sm:$0xf]  ;;  %s238_s6 = sadd.s32 1, %s1326_s6  }
  0x13   : >> { %247 = vst [vmem:[%s1404_s5 + $0x4] sm:$0xf] %v246_v1  ;;  %v254_v5 = vld [vmem:[%s1402_s30 + $0x1c] sm:$0xf]  ;;  %v256_v6 = vld [vmem:[%s1402_s30 + $0x20] sm:$0xf] }
  0x14   : >> { %249 = vst [vmem:[%s1404_s5 + $0x8] sm:$0xf] %v248_v2  ;;  %v258_v7 = vld [vmem:[%s1402_s30 + $0x24] sm:$0xf]  ;;  %v260_v8 = vld [vmem:[%s1402_s30 + $0x30] sm:$0xf] }
  0x15   : >> { %251 = vst [vmem:[%s1404_s5 + $0xc] sm:$0xf] %v250_v3  ;;  %v262_v9 = vld [vmem:[%s1402_s30 + $0x34] sm:$0xf]  ;;  %v264_v10 = vld [vmem:[%s1402_s30 + $0x38] sm:$0xf] }
  0x16   : >> { %253 = vst [vmem:[%s1404_s5 + $0x10] sm:$0xf] %v252_v4  ;;  %v266_v11 = vld [vmem:[%s1402_s30 + $0x3c] sm:$0xf]  ;;  %v268_v12 = vld [vmem:[%s1402_s30 + $0x48] sm:$0xf] }
  0x17   : >> { %255 = vst [vmem:[%s1404_s5 + $0x14] sm:$0xf] %v254_v5  ;;  %v270_v13 = vld [vmem:[%s1402_s30 + $0x4c] sm:$0xf]  ;;  %v272_v14 = vld [vmem:[%s1402_s30 + $0x50] sm:$0xf] }
  0x18   : >> { %257 = vst [vmem:[%s1404_s5 + $0x18] sm:$0xf] %v256_v6  ;;  %v274_v15 = vld [vmem:[%s1402_s30 + $0x54] sm:$0xf]  ;;  %p237_p6 = scmp.ge.s32.totalorder %s238_s6, 1 }
  0x19   : >> { %259 = vst [vmem:[%s1404_s5 + $0x1c] sm:$0xf] %v258_v7 }
  0x1a   : >> { %261 = vst [vmem:[%s1404_s5 + $0x20] sm:$0xf] %v260_v8 }
  0x1b   : >> { %263 = vst [vmem:[%s1404_s5 + $0x24] sm:$0xf] %v262_v9 }
  0x1c   : >> { %265 = vst [vmem:[%s1404_s5 + $0x28] sm:$0xf] %v264_v10 }
  0x1d   : >> { %267 = vst [vmem:[%s1404_s5 + $0x2c] sm:$0xf] %v266_v11  ;;  %240 = sbr.rel (!%p237_p6) target bundleno = 17 (0x11), region = 207 }
  0x1e   : >> { %269 = vst [vmem:[%s1404_s5 + $0x30] sm:$0xf] %v268_v12 }
  0x1f   : >> { %271 = vst [vmem:[%s1404_s5 + $0x34] sm:$0xf] %v270_v13 }
  0x20   : >> { %273 = vst [vmem:[%s1404_s5 + $0x38] sm:$0xf] %v272_v14 }
  0x21   : >> { %275 = vst [vmem:[%s1404_s5 + $0x3c] sm:$0xf] %v274_v15 }
  0x22 PF: > { %441 = sbr.rel (!%p1384_p3) target bundleno = 43 (0x2b), region = 90  ;;  %s443_s7 = sand.u32 (%p1384_p3), 1, %s1310_s16  }
  0x23   : > { %s1099_s8 = smul.u32 (%p1384_p3), 96, %s1318_s18  ;;  %s1098_s9 = sshll.u32 (%p1384_p3), %s443_s7, 5 }
  0x24   : > { %s445_s13 = scalar_lea.vmem (%p1384_p3), [#allocation4], %s1098_s9 }
  0x25   : > { %s958_s12 = scalar_lea.vmem (%p1384_p3), %s1649_s1, %s1099_s8 }
  0x26   : > { %v1100_v16 = vld [vmem:[%s958_s12 + $0x10] sm:$0xff] (%p1384_p3)   ;;  %v1102_v17 = vld [vmem:[%s958_s12 + $0x28] sm:$0xff] (%p1384_p3)   ;;  %v1104_v18 = vld [vmem:[%s958_s12 + $0x40] sm:$0xff] (%p1384_p3)  }
  0x27   : > { %471 = vst [vmem:[%s445_s13] sm:$0xff] %v1100_v16   ;;  %v1106_v19 = vld [vmem:[%s958_s12 + $0x58] sm:$0xff]  }
  0x28   : > { %475 = vst [vmem:[%s445_s13 + $0x8] sm:$0xff] %v1102_v17  }
  0x29   : > { %479 = vst [vmem:[%s445_s13 + $0x10] sm:$0xff] %v1104_v18  }
  0x2a   : > { %483 = vst [vmem:[%s445_s13 + $0x18] sm:$0xff] %v1106_v19  }
  0x2b PF: > { %p1108_p7 = scmp.ge.s32.totalorder %s1322_s19, 1  ;;  %p524_p8 = scmp.lt.s32.totalorder %s1322_s19, 3 }
  0x2d   : > { %p525_p9 = pnand %p1108_p7, %p524_p8 }
  0x2e   : > { %s531_s14 = sand.u32 (!%p525_p9), 1, %s1306_s15   ;;  %p597_p10 = scmp.lt.s32.totalorder (!%p525_p9), %s1314_s17, 1 }
  0x2f   : > { %528 = sbr.rel (%p525_p9) target bundleno = 104 (0x68), region = 131  ;;  %s1109_s21 = sshll.u32 (!%p525_p9), %s531_s14, 6 }
  0x30   : > { %s1110_s22 = sshll.u32 (!%p525_p9), %s531_s14, 5  ;;  %s1456_s23 = scalar_lea.vmem (!%p525_p9), [#allocation3], %s1109_s21 }
  0x31   : > { %s1460_s25 = scalar_lea.vmem (!%p525_p9), [#allocation4], %s1110_s22 }
  0x34   : > { %v1125_v20 = vld [vmem:[%s1456_s23] sm:$0xff]   ;;  %vm641_vm0 = vcmask 64512   ;;  %v1172_v21 = vld [vmem:[%s1456_s23 + $0x8] sm:$0xff]   ;;  %v1173_v26 = vld [vmem:[%s1456_s23 + $0x10] sm:$0xff]   ;;  %s1661_s17 = smov (!%p597_p10, %s1314_s17), 1  ;;  %vm863_vm1 = vcmask 60416  }
  0x35   : > { %v1157_v22 = vld [vmem:[%s1460_s25] sm:$0xff]   ;;  %v1126_v23 = vunpack.c.l.bf16 %v1125_v20  ;;  %v1127_v24 = vunpack.c.h.bf16 %v1125_v20  ;;  %v1130_v25 = vunpack.c.l.bf16 %v1172_v21  ;;  %v1131_v27 = vunpack.c.h.bf16 %v1172_v21  ;;  %v1174_v29 = vld [vmem:[%s1456_s23 + $0x18] sm:$0xff]   ;;  %v1179_v32 = vld [vmem:[%s1460_s25 + $0x8] sm:$0xff]   ;;  %s1123_s5 = sshll.u32 %s1661_s17, 4 }
  0x36   : > { %v1158_v28 = vunpack.c.l.bf16 %v1157_v22  ;;  %v1134_v30 = vunpack.c.l.bf16 %v1173_v26  ;;  %v1135_v31 = vunpack.c.h.bf16 %v1173_v26  ;;  %v1138_v33 = vunpack.c.l.bf16 %v1174_v29  ;;  %v1175_v34 = vld [vmem:[%s1456_s23 + $0x20] sm:$0xff]   ;;  %v1176_v39 = vld [vmem:[%s1456_s23 + $0x28] sm:$0xff]   ;;  %v1180_v40 = vld [vmem:[%s1460_s25 + $0x10] sm:$0xff]   ;;  %s1615_s7 = scalar_lea.vmem %s1652_s4, %s1123_s5 }
  0x37   : > { %642 = vst.msk [vmem:[#allocation2] sm:$0xff] %vm641_vm0, %v1126_v23  ;;  %v1139_v35 = vunpack.c.h.bf16 %v1174_v29  ;;  %v1475_v36 = vld [vmem:[%s1651_s3] ss:$0 sm:$0xff]  ;;  %v1162_v38 = vunpack.c.l.bf16 %v1179_v32  ;;  %v1142_v41 = vunpack.c.l.bf16 %v1175_v34  ;;  %v1177_v42 = vld [vmem:[%s1456_s23 + $0x30] sm:$0xff]   ;;  %v1490_v43 = vld [vmem:[%s1650_s2 + $0x4] ss:$0 sm:$0xff]  ;;  %v1143_v44 = vunpack.c.h.bf16 %v1175_v34 }
  0x38   : > { %643 = vst.msk [vmem:[#allocation2 + $0x8] sm:$0xff] %vm641_vm0, %v1127_v24  ;;  %v1480_v37 = vld [vmem:[%s1650_s2] ss:$0 sm:$0xff]  ;;  %v1494_v45 = vld [vmem:[%s1456_s23 + $0x38] sm:$0xff]   ;;  %v1146_v47 = vunpack.c.l.bf16 %v1176_v39  ;;  %v1501_v50 = vld [vmem:[%s1650_s2 + $0x8] ss:$0 sm:$0xff]  ;;  %v1147_v52 = vunpack.c.h.bf16 %v1176_v39  ;;  %v1166_v55 = vunpack.c.l.bf16 %v1180_v40  ;;  %v1150_v61 = vunpack.c.l.bf16 %v1177_v42 }
  0x39   : > { %644 = vst.msk [vmem:[#allocation2 + $0x10] sm:$0xff] %vm641_vm0, %v1130_v25  ;;  %v1506_v51 = vld [vmem:[%s1650_s2 + $0x1] ss:$0 sm:$0xff]  ;;  %v1181_v56 = vld [vmem:[%s1460_s25 + $0x18] sm:$0xff]   ;;  %v1151_v62 = vunpack.c.h.bf16 %v1177_v42  ;;  %v1154_v63 = vunpack.c.l.bf16 %v1494_v45  ;;  %v1519_v0 = vld [vmem:[%s1650_s2 + $0x5] ss:$0 sm:$0xff]  ;;  %v1155_v9 = vunpack.c.h.bf16 %v1494_v45 }
  0x3a   : > { %645 = vst.msk [vmem:[#allocation2 + $0x18] sm:$0xff] %vm641_vm0, %v1131_v27  ;;  %v1170_v10 = vunpack.c.l.bf16 %v1181_v56  ;;  %v1531_v13 = vld [vmem:[%s1650_s2 + $0x9] ss:$0 sm:$0xff]  ;;  %v1538_v18 = vld [vmem:[%s1650_s2 + $0x2] ss:$0 sm:$0xff] }
  0x3b   : > { %674 = vst.msk [vmem:[#allocation2 + $0x20] sm:$0xff] %vm641_vm0, %v1158_v28  ;;  %v1569_v56 = vld [vmem:[%s1650_s2 + $0x3] ss:$0 sm:$0xff] }
  0x3c   : > { %646 = vst.msk [vmem:[#allocation2 + $0x30] sm:$0xff] %vm641_vm0, %v1134_v30 }
  0x3d   : > { %647 = vst.msk [vmem:[#allocation2 + $0x38] sm:$0xff] %vm641_vm0, %v1135_v31 }
  0x3e   : > { %648 = vst.msk [vmem:[#allocation2 + $0x40] sm:$0xff] %vm641_vm0, %v1138_v33  ;;  %v686_v46 = vld [vmem:[#allocation2] sm:$0xff] }
  0x3f   : > { %649 = vst.msk [vmem:[#allocation2 + $0x48] sm:$0xff] %vm641_vm0, %v1139_v35  ;;  %v692_v48 = vmul.f32 %v1480_v37, %v686_v46  ;;  %v700_v49 = vld [vmem:[#allocation2 + $0x1] sm:$0xff] }
  0x40   : > { %676 = vst.msk [vmem:[#allocation2 + $0x50] sm:$0xff] %vm641_vm0, %v1162_v38  ;;  %v715_v53 = vld [vmem:[#allocation2 + $0x2] sm:$0xff]  ;;  %v707_v58 = vmul.f32 %v1490_v43, %v700_v49  ;;  %v716_v1 = vld [vmem:[#allocation2 + $0xa] sm:$0xff] }
  0x41   : > { %v687_v54 = vld [vmem:[#allocation2 + $0x8] sm:$0xff]  ;;  %650 = vst.msk [vmem:[#allocation2 + $0x60] sm:$0xff] %vm641_vm0, %v1142_v41  ;;  %v696_v57 = vadd.f32 %v1475_v36, %v692_v48  ;;  %v722_v3 = vmul.f32 %v1501_v50, %v715_v53  ;;  %v688_v7 = vld [vmem:[#allocation2 + $0x10] sm:$0xff]  ;;  %v723_v20 = vmul.f32 %v1501_v50, %v716_v1  ;;  %v689_v30 = vld [vmem:[#allocation2 + $0x18] sm:$0xff] }
  0x42   : > { %v693_v59 = vmul.f32 %v1480_v37, %v687_v54  ;;  %v701_v60 = vld [vmem:[#allocation2 + $0x9] sm:$0xff]  ;;  %651 = vst.msk [vmem:[#allocation2 + $0x68] sm:$0xff] %vm641_vm0, %v1143_v44  ;;  %v702_v8 = vld [vmem:[#allocation2 + $0x11] sm:$0xff]  ;;  %v694_v15 = vmul.f32 %v1480_v37, %v688_v7  ;;  %v1556_v41 = vld [vmem:[%s1650_s2 + $0x6] ss:$0 sm:$0xff]  ;;  %v695_v53 = vmul.f32 %v1480_v37, %v689_v30 }
  0x43   : > { %652 = vst.msk [vmem:[#allocation2 + $0x70] sm:$0xff] %vm641_vm0, %v1146_v47  ;;  %v711_v2 = vadd.f32 %v707_v58, %v696_v57  ;;  %v731_v4 = vld [vmem:[#allocation2 + $0x30] sm:$0xff]  ;;  %v708_v6 = vmul.f32 %v1490_v43, %v701_v60  ;;  %v709_v25 = vmul.f32 %v1490_v43, %v702_v8  ;;  %v1563_v48 = vld [vmem:[%s1650_s2 + $0xa] ss:$0 sm:$0xff] }
  0x44   : > { %v697_v5 = vadd.f32 %v1475_v36, %v693_v59  ;;  %653 = vst.msk [vmem:[#allocation2 + $0x78] sm:$0xff] %vm641_vm0, %v1147_v52  ;;  %v737_v11 = vmul.f32 %v1506_v51, %v731_v4  ;;  %v745_v12 = vld [vmem:[#allocation2 + $0x31] sm:$0xff]  ;;  %v698_v24 = vadd.f32 %v1475_v36, %v694_v15 }
  0x45   : > { %v732_v14 = vld [vmem:[#allocation2 + $0x38] sm:$0xff]  ;;  %678 = vst.msk [vmem:[#allocation2 + $0x80] sm:$0xff] %vm641_vm0, %v1166_v55  ;;  %v726_v16 = vadd.f32 %v722_v3, %v711_v2  ;;  %v733_v26 = vld [vmem:[#allocation2 + $0x40] sm:$0xff]  ;;  %v751_v28 = vmul.f32 %v1519_v0, %v745_v12  ;;  %v699_v12 = vadd.f32 %v1475_v36, %v695_v53 }
  0x46   : > { %v759_v17 = vld [vmem:[#allocation2 + $0x32] sm:$0xff]  ;;  %v712_v19 = vadd.f32 %v708_v6, %v697_v5  ;;  %654 = vst.msk [vmem:[#allocation2 + $0x90] sm:$0xff] %vm641_vm0, %v1150_v61  ;;  %v738_v22 = vmul.f32 %v1506_v51, %v732_v14  ;;  %v760_v33 = vld [vmem:[#allocation2 + $0x3a] sm:$0xff]  ;;  %v713_v34 = vadd.f32 %v709_v25, %v698_v24  ;;  %v739_v38 = vmul.f32 %v1506_v51, %v733_v26  ;;  %v761_v52 = vld [vmem:[#allocation2 + $0x42] sm:$0xff] }
  0x47   : > { %v717_v21 = vld [vmem:[#allocation2 + $0x12] sm:$0xff]  ;;  %655 = vst.msk [vmem:[#allocation2 + $0x98] sm:$0xff] %vm641_vm0, %v1151_v62  ;;  %v741_v27 = vadd.f32 %v737_v11, %v726_v16  ;;  %v765_v31 = vmul.f32 %v1531_v13, %v759_v17  ;;  %v747_v46 = vld [vmem:[#allocation2 + $0x41] sm:$0xff]  ;;  %v766_v58 = vmul.f32 %v1531_v13, %v760_v33  ;;  %v767_v5 = vmul.f32 %v1531_v13, %v761_v52  ;;  %v1597_v26 = vld [vmem:[%s1650_s2 + $0xb] ss:$0 sm:$0xff] }
  0x48   : > { %v746_v23 = vld [vmem:[#allocation2 + $0x39] sm:$0xff]  ;;  %v727_v29 = vadd.f32 %v723_v20, %v712_v19  ;;  %656 = vst.msk [vmem:[#allocation2 + $0xa0] sm:$0xff] %vm641_vm0, %v1154_v63  ;;  %v724_v35 = vmul.f32 %v1501_v50, %v717_v21  ;;  %v753_v63 = vmul.f32 %v1519_v0, %v747_v46  ;;  %v1584_v16 = vld [vmem:[%s1650_s2 + $0x7] ss:$0 sm:$0xff]  ;;  %v734_v21 = vld [vmem:[#allocation2 + $0x48] sm:$0xff] }
  0x49   : > { %v774_v32 = vld [vmem:[#allocation2 + $0x60] sm:$0xff]  ;;  %657 = vst.msk [vmem:[#allocation2 + $0xa8] sm:$0xff] %vm641_vm0, %v1155_v9  ;;  %v755_v39 = vadd.f32 %v751_v28, %v741_v27  ;;  %v752_v44 = vmul.f32 %v1519_v0, %v746_v23  ;;  %v775_v45 = vld [vmem:[#allocation2 + $0x68] sm:$0xff] }
  0x4a   : > { %v780_v40 = vmul.f32 %v1538_v18, %v774_v32  ;;  %v742_v42 = vadd.f32 %v738_v22, %v727_v29  ;;  %680 = vst.msk [vmem:[#allocation2 + $0xb0] sm:$0xff] %vm641_vm0, %v1170_v10  ;;  %v788_v47 = vld [vmem:[#allocation2 + $0x61] sm:$0xff]  ;;  %v728_v49 = vadd.f32 %v724_v35, %v713_v34  ;;  %v781_v59 = vmul.f32 %v1538_v18, %v775_v45  ;;  %v776_v60 = vld [vmem:[#allocation2 + $0x70] sm:$0xff]  ;;  %v703_v6 = vld [vmem:[#allocation2 + $0x19] sm:$0xff] }
  0x4b   : > { %v769_v54 = vadd.f32 %v765_v31, %v755_v39  ;;  %v802_v55 = vld [vmem:[#allocation2 + $0x62] sm:$0xff]  ;;  %v794_v37 = vmul.f32 %v1556_v41, %v788_v47  ;;  %v803_v4 = vld [vmem:[#allocation2 + $0x6a] sm:$0xff]  ;;  %v782_v10 = vmul.f32 %v1538_v18, %v776_v60  ;;  %v718_v20 = vld [vmem:[#allocation2 + $0x1a] sm:$0xff]  ;;  %v710_v25 = vmul.f32 %v1490_v43, %v703_v6 }
  0x4c   : > { %v756_v57 = vadd.f32 %v752_v44, %v742_v42  ;;  %v789_v61 = vld [vmem:[#allocation2 + $0x69] sm:$0xff]  ;;  %v743_v62 = vadd.f32 %v739_v38, %v728_v49  ;;  %v808_v7 = vmul.f32 %v1563_v48, %v802_v55  ;;  %v790_v11 = vld [vmem:[#allocation2 + $0x71] sm:$0xff]  ;;  %v809_v23 = vmul.f32 %v1563_v48, %v803_v4 }
  0x4d   : > { %v784_v1 = vadd.f32 %v780_v40, %v769_v54  ;;  %v817_v2 = vld [vmem:[#allocation2 + $0x90] sm:$0xff]  ;;  %v795_v19 = vmul.f32 %v1556_v41, %v789_v61  ;;  %v796_v29 = vmul.f32 %v1556_v41, %v790_v11  ;;  %v714_v34 = vadd.f32 %v710_v25, %v699_v12 }
  0x4e   : > { %v770_v3 = vadd.f32 %v766_v58, %v756_v57  ;;  %v818_v8 = vld [vmem:[#allocation2 + $0x98] sm:$0xff]  ;;  %v757_v9 = vadd.f32 %v753_v63, %v743_v62  ;;  %v823_v15 = vmul.f32 %v1569_v56, %v817_v2  ;;  %v725_v35 = vmul.f32 %v1501_v50, %v718_v20  ;;  %v748_v44 = vld [vmem:[#allocation2 + $0x49] sm:$0xff] }
  0x4f   : > { %v798_v14 = vadd.f32 %v794_v37, %v784_v1  ;;  %v831_v22 = vld [vmem:[#allocation2 + $0x91] sm:$0xff]  ;;  %v824_v28 = vmul.f32 %v1569_v56, %v818_v8  ;;  %v819_v31 = vld [vmem:[#allocation2 + $0xa0] sm:$0xff]  ;;  %v740_v38 = vmul.f32 %v1506_v51, %v734_v21  ;;  %v754_v61 = vmul.f32 %v1519_v0, %v748_v44 }
  0x50   : > { %v785_v17 = vadd.f32 %v781_v59, %v770_v3  ;;  %v771_v24 = vadd.f32 %v767_v5, %v757_v9  ;;  %v804_v30 = vld [vmem:[#allocation2 + $0x72] sm:$0xff]  ;;  %v837_v40 = vmul.f32 %v1584_v16, %v831_v22  ;;  %v846_v45 = vld [vmem:[#allocation2 + $0x9a] sm:$0xff]  ;;  %v825_v49 = vmul.f32 %v1569_v56, %v819_v31  ;;  %v762_v57 = vld [vmem:[#allocation2 + $0x4a] sm:$0xff] }
  0x51   : > { %v812_v36 = vadd.f32 %v808_v7, %v798_v14  ;;  %v845_v32 = vld [vmem:[#allocation2 + $0x92] sm:$0xff]  ;;  %v810_v47 = vmul.f32 %v1563_v48, %v804_v30  ;;  %v833_v52 = vld [vmem:[#allocation2 + $0xa1] sm:$0xff]  ;;  %v729_v53 = vadd.f32 %v725_v35, %v714_v34  ;;  %v852_v1 = vmul.f32 %v1597_v26, %v846_v45  ;;  %v848_v25 = vld [vmem:[#allocation2 + $0xaa] sm:$0xff] }
  0x52   : > { %v799_v27 = vadd.f32 %v795_v19, %v785_v17  ;;  %v832_v33 = vld [vmem:[#allocation2 + $0x99] sm:$0xff]  ;;  %v786_v43 = vadd.f32 %v782_v10, %v771_v24  ;;  %v851_v55 = vmul.f32 %v1597_v26, %v845_v32  ;;  %v839_v37 = vmul.f32 %v1584_v16, %v833_v52  ;;  %v847_v2 = vld [vmem:[#allocation2 + $0xa2] sm:$0xff] }
  0x53   : > { %v827_v39 = vadd.f32 %v823_v15, %v812_v36  ;;  %v838_v51 = vmul.f32 %v1584_v16, %v832_v33  ;;  %v777_v58 = vld [vmem:[#allocation2 + $0x78] sm:$0xff]  ;;  %v744_v60 = vadd.f32 %v740_v38, %v729_v53  ;;  %v768_v5 = vmul.f32 %v1531_v13, %v762_v57  ;;  %v820_v15 = vld [vmem:[#allocation2 + $0xa8] sm:$0xff] }
  0x54   : > { %v813_v42 = vadd.f32 %v809_v23, %v799_v27  ;;  %v800_v46 = vadd.f32 %v796_v29, %v786_v43  ;;  %v783_v0 = vmul.f32 %v1538_v18, %v777_v58  ;;  %v791_v8 = vld [vmem:[#allocation2 + $0x79] sm:$0xff]  ;;  %v853_v10 = vmul.f32 %v1597_v26, %v847_v2  ;;  %v834_v23 = vld [vmem:[#allocation2 + $0xa9] sm:$0xff] }
  0x55   : > { %v841_v54 = vadd.f32 %v837_v40, %v827_v39  ;;  %v758_v4 = vadd.f32 %v754_v61, %v744_v60  ;;  %v805_v14 = vld [vmem:[#allocation2 + $0x7a] sm:$0xff]  ;;  %v797_v20 = vmul.f32 %v1556_v41, %v791_v8  ;;  %v826_v22 = vmul.f32 %v1569_v56, %v820_v15 }
  0x56   : > { %v828_v50 = vadd.f32 %v824_v28, %v813_v42  ;;  %v814_v59 = vadd.f32 %v810_v47, %v800_v46  ;;  %v811_v21 = vmul.f32 %v1563_v48, %v805_v14  ;;  %v840_v27 = vmul.f32 %v1584_v16, %v834_v23 }
  0x57   : > { %v855_v62 = vadd.f32 %v851_v55, %v841_v54  ;;  %v772_v11 = vadd.f32 %v768_v5, %v758_v4  ;;  %v854_v41 = vmul.f32 %v1597_v26, %v848_v25 }
  0x58   : > { %v842_v63 = vadd.f32 %v838_v51, %v828_v50  ;;  %v829_v3 = vadd.f32 %v825_v49, %v814_v59 }
  0x59   : > { %v859_v6 = vpack.c.bf16 %v855_v62, %v855_v62  ;;  %v787_v19 = vadd.f32 %v783_v0, %v772_v11 }
  0x5a   : > { %v856_v7 = vadd.f32 %v852_v1, %v842_v63  ;;  %v843_v9 = vadd.f32 %v839_v37, %v829_v3 }
  0x5b   : > { %864 = vst.msk [vmem:[%s1615_s7] sm:$0xf] %vm863_vm1, %v859_v6  ;;  %v801_v18 = vadd.f32 %v797_v20, %v787_v19 }
  0x5c   : > { %v860_v12 = vpack.c.bf16 %v856_v7, %v856_v7  ;;  %v857_v17 = vadd.f32 %v853_v10, %v843_v9 }
  0x5d   : > { %v815_v24 = vadd.f32 %v811_v21, %v801_v18 }
  0x5e   : > { %865 = vst.msk [vmem:[%s1615_s7 + $0x4] sm:$0xf] %vm863_vm1, %v860_v12  ;;  %v861_v13 = vpack.c.bf16 %v857_v17, %v857_v17 }
  0x5f   : > { %v830_v36 = vadd.f32 %v826_v22, %v815_v24 }
  0x60   : > { %866 = vst.msk [vmem:[%s1615_s7 + $0x8] sm:$0xf] %vm863_vm1, %v861_v13 }
  0x61   : > { %v844_v28 = vadd.f32 %v840_v27, %v830_v36 }
  0x63   : > { %v858_v29 = vadd.f32 %v854_v41, %v844_v28 }
  0x65   : > { %v862_v30 = vpack.c.bf16 %v858_v29, %v858_v29 }
  0x67   : > { %867 = vst.msk [vmem:[%s1615_s7 + $0xc] sm:$0xf] %vm863_vm1, %v862_v30 }
  0x68 PF: > { %s14_s19 = sadd.s32 1, %s1322_s19   ;;  %s1654_s15 = smov %s1310_s16 }
  0x69   : > { %p11_p11 = scmp.ge.s32.totalorder %s14_s19, 4   ;;  %s1655_s16 = smov %s1392_s24 }
  0x6a   : > { %s1656_s17 = smov %s1318_s18  ;;  %s1657_s18 = smov %s1659_s20 }
  0x6b   :  { %13 = sbr.rel (!%p11_p11) target bundleno = 3 (0x3), region = 229 }

</bundles_post_ra>
